<compile_context>
chip_gen: v6e
topology: v6e:2x2x1
jax: 0.10.0
libtpu: 0.0.40
codegen_flags: <defaults>
</compile_context>

<pallas_src>
import functools

import jax
import jax.numpy as jnp
from jax import lax
from jax.experimental import pallas as pl
from jax.experimental.pallas import tpu as pltpu

_LANE = 128  # TPU lane width; pad feature dims to a multiple of this.


def _round_up(n, m):
    return ((n + m - 1) // m) * m


def _encoder_kernel(*refs, n_layers, eps):
    """Fused encoder: chain of (x @ W + b) -> BatchNorm(train) -> [ReLU].

    refs layout: x_ref, (w, b, gamma, beta) * n_layers, o_ref
    All tensors are feature-padded to multiples of 128 lanes; padded columns of
    every intermediate stay exactly zero (zero W columns, zero b/gamma/beta).
    """
    x_ref = refs[0]
    o_ref = refs[-1]
    p_refs = refs[1:-1]

    x = x_ref[...]
    for i in range(n_layers):
        w_ref, b_ref, g_ref, beta_ref = p_refs[4 * i: 4 * i + 4]

        # Linear (MXU, f32 accumulate).
        y = jnp.dot(x, w_ref[...], preferred_element_type=jnp.float32) + b_ref[...]

        # BatchNorm1d (training forward): per-feature stats over the batch axis.
        mean = jnp.mean(y, axis=0, keepdims=True)
        centered = y - mean
        var = jnp.mean(centered * centered, axis=0, keepdims=True)  # biased var
        # Fold gamma into the normalization scale (one fewer full-tensor multiply).
        scale = g_ref[...] * lax.rsqrt(var + eps)
        y = centered * scale + beta_ref[...]

        # Dropout: identity (eval mode).
        if i < n_layers - 1:  # last ReLU deleted in _build_layers
            y = jnp.maximum(y, 0.0)
        x = y

    o_ref[...] = x.astype(o_ref.dtype)


def _pad2d(a, rows, cols):
    return jnp.pad(a, ((0, rows - a.shape[0]), (0, cols - a.shape[1])))


def encoder_layer_forward(x, params, *, eps=1e-5):
    """EncoderLayer forward via one fused Pallas kernel.

    x:      [N, D_in] float32 (N should be a multiple of 8 for best layout)
    params: list of (w [D_in, D_out], b [1, D_out], gamma [1, D_out], beta [1, D_out])
    """
    n_layers = len(params)
    n, d_in = x.shape
    d_last = params[-1][0].shape[1]

    # Zero-pad every feature dimension to a multiple of 128 (lane-dense).
    d_in_pad = _round_up(d_in, _LANE)
    x_pad = _pad2d(x.astype(jnp.float32), n, d_in_pad)

    flat_inputs = [x_pad]
    cur_in_pad = d_in_pad
    for (w, b, g, beta) in params:
        d_out = w.shape[1]
        d_out_pad = _round_up(d_out, _LANE)
        flat_inputs.append(_pad2d(w.astype(jnp.float32), cur_in_pad, d_out_pad))
        flat_inputs.append(_pad2d(b.astype(jnp.float32), 1, d_out_pad))
        flat_inputs.append(_pad2d(g.astype(jnp.float32), 1, d_out_pad))
        flat_inputs.append(_pad2d(beta.astype(jnp.float32), 1, d_out_pad))
        cur_in_pad = d_out_pad
    d_last_pad = cur_in_pad

    kernel = functools.partial(_encoder_kernel, n_layers=n_layers, eps=eps)

    # Single invocation (no grid): everything fits comfortably in VMEM at these
    # sizes, so the whole encoder runs in one launch with no HBM round-trips for
    # intermediates.
    # TODO(synk): for large D_out, tile the grid over the feature axis only
    # (never over N — batch-tiling would break single-pass BN statistics).
    out_pad = pl.pallas_call(
        kernel,
        out_shape=jax.ShapeDtypeStruct((n, d_last_pad), jnp.float32),
        in_specs=[pl.BlockSpec(memory_space=pltpu.MemorySpace.VMEM)
                  for _ in flat_inputs],
        out_specs=pl.BlockSpec(memory_space=pltpu.MemorySpace.VMEM),
    )(*flat_inputs)

    return out_pad[:, :d_last]


def init_encoder_params(key, layer_dims):
    """Deterministic parameter init mirroring EncoderLayer.__init__ shapes."""
    params = []
    input_dim = layer_dims[0]
    for idx, output_dim in enumerate(layer_dims):
        k_w, k_b = jax.random.split(jax.random.fold_in(key, idx))
        bound = 1.0 / jnp.sqrt(input_dim)
        # nn.Linear: weight [out, in], bias [out]  -> stored as W^T for x @ W.
        w = jax.random.uniform(k_w, (input_dim, output_dim),
                               minval=-bound, maxval=bound, dtype=jnp.float32)
        b = jax.random.uniform(k_b, (1, output_dim),
                               minval=-bound, maxval=bound, dtype=jnp.float32)
        # nn.BatchNorm1d: gamma=1, beta=0.
        gamma = jnp.ones((1, output_dim), jnp.float32)
        beta = jnp.zeros((1, output_dim), jnp.float32)
        params.append((w, b, gamma, beta))
        input_dim = output_dim
    return params


def _reference_forward(x, params, eps=1e-5):
    """Pure-JAX reference for correctness check (unpadded)."""
    n_blocks = len(params)
    for i, (w, b, gamma, beta) in enumerate(params):
        y = x @ w + b
        mean = jnp.mean(y, axis=0, keepdims=True)
        var = jnp.mean((y - mean) ** 2, axis=0, keepdims=True)
        y = (y - mean) / jnp.sqrt(var + eps)
        y = y * gamma + beta
        if i < n_blocks - 1:
            y = jnp.maximum(y, 0.0)
        x = y
    return x


if __name__ == "__main__":
    key = jax.random.PRNGKey(0)
    layer_dims = [32, 64, 32]   # EncoderLayer([32, 64, 32]); input_dim = 32
    batch = 8

    k_x, k_p = jax.random.split(key)
    x = jax.random.normal(k_x, (batch, layer_dims[0]), dtype=jnp.float32)
    params = init_encoder_params(k_p, layer_dims)

    out = encoder_layer_forward(x, params)
    out = jax.block_until_ready(out)

    ref = _reference_forward(x, params)
    assert out.shape == (batch, layer_dims[-1])
    assert jnp.allclose(out, ref, atol=1e-4, rtol=1e-4)

    print("KERNEL_OK")
</pallas_src>

<mosaic_0001>
module attributes {stable_mosaic.version = 11 : i64} {
  func.func @_encoder_kernel(%arg0: memref<8x128xf32, #tpu.memory_space<vmem>>, %arg1: memref<128x128xf32, #tpu.memory_space<vmem>>, %arg2: memref<1x128xf32, #tpu.memory_space<vmem>>, %arg3: memref<1x128xf32, #tpu.memory_space<vmem>>, %arg4: memref<1x128xf32, #tpu.memory_space<vmem>>, %arg5: memref<128x128xf32, #tpu.memory_space<vmem>>, %arg6: memref<1x128xf32, #tpu.memory_space<vmem>>, %arg7: memref<1x128xf32, #tpu.memory_space<vmem>>, %arg8: memref<1x128xf32, #tpu.memory_space<vmem>>, %arg9: memref<128x128xf32, #tpu.memory_space<vmem>>, %arg10: memref<1x128xf32, #tpu.memory_space<vmem>>, %arg11: memref<1x128xf32, #tpu.memory_space<vmem>>, %arg12: memref<1x128xf32, #tpu.memory_space<vmem>>, %arg13: memref<8x128xf32, #tpu.memory_space<vmem>>) attributes {dimension_semantics = [], scalar_prefetch = 0 : i64, scratch_operands = 0 : i64, tpu.core_type = #tpu.core_type<tc>} {
    %c0 = arith.constant 0 : index
    %c0_0 = arith.constant 0 : index
    %0 = vector.load %arg0[%c0, %c0_0] : memref<8x128xf32, #tpu.memory_space<vmem>>, vector<8x128xf32>
    %c0_1 = arith.constant 0 : index
    %c0_2 = arith.constant 0 : index
    %1 = vector.load %arg1[%c0_1, %c0_2] : memref<128x128xf32, #tpu.memory_space<vmem>>, vector<128x128xf32>
    %cst = arith.constant dense<0.000000e+00> : vector<8x128xf32>
    %2 = tpu.matmul %0, %1, %cst {dimension_numbers = #tpu.dot_dimension_numbers<[1], [0], [0], [1], [0, 0, 1, 1], [], []>} : vector<8x128xf32>, vector<128x128xf32>, vector<8x128xf32> -> vector<8x128xf32>
    %c0_3 = arith.constant 0 : index
    %c0_4 = arith.constant 0 : index
    %3 = vector.load %arg2[%c0_3, %c0_4] : memref<1x128xf32, #tpu.memory_space<vmem>>, vector<1x128xf32>
    %4 = vector.broadcast %3 : vector<1x128xf32> to vector<8x128xf32>
    %5 = arith.addf %2, %4 : vector<8x128xf32>
    %cst_5 = arith.constant dense<0.000000e+00> : vector<128xf32>
    %6 = vector.multi_reduction <add>, %5, %cst_5 [0] : vector<8x128xf32> to vector<128xf32>
    %7 = vector.shape_cast %6 : vector<128xf32> to vector<1x128xf32>
    %cst_6 = arith.constant 8.000000e+00 : f32
    %8 = vector.broadcast %cst_6 : f32 to vector<1x128xf32>
    %9 = arith.divf %7, %8 : vector<1x128xf32>
    %10 = vector.broadcast %9 : vector<1x128xf32> to vector<8x128xf32>
    %11 = arith.subf %5, %10 : vector<8x128xf32>
    %12 = arith.mulf %11, %11 : vector<8x128xf32>
    %cst_7 = arith.constant dense<0.000000e+00> : vector<128xf32>
    %13 = vector.multi_reduction <add>, %12, %cst_7 [0] : vector<8x128xf32> to vector<128xf32>
    %14 = vector.shape_cast %13 : vector<128xf32> to vector<1x128xf32>
    %cst_8 = arith.constant 8.000000e+00 : f32
    %15 = vector.broadcast %cst_8 : f32 to vector<1x128xf32>
    %16 = arith.divf %14, %15 : vector<1x128xf32>
    %c0_9 = arith.constant 0 : index
    %c0_10 = arith.constant 0 : index
    %17 = vector.load %arg3[%c0_9, %c0_10] : memref<1x128xf32, #tpu.memory_space<vmem>>, vector<1x128xf32>
    %cst_11 = arith.constant 9.99999974E-6 : f32
    %18 = vector.broadcast %cst_11 : f32 to vector<1x128xf32>
    %19 = arith.addf %16, %18 : vector<1x128xf32>
    %20 = math.rsqrt %19 : vector<1x128xf32>
    %21 = arith.mulf %17, %20 : vector<1x128xf32>
    %22 = vector.broadcast %21 : vector<1x128xf32> to vector<8x128xf32>
    %23 = arith.mulf %11, %22 : vector<8x128xf32>
    %c0_12 = arith.constant 0 : index
    %c0_13 = arith.constant 0 : index
    %24 = vector.load %arg4[%c0_12, %c0_13] : memref<1x128xf32, #tpu.memory_space<vmem>>, vector<1x128xf32>
    %25 = vector.broadcast %24 : vector<1x128xf32> to vector<8x128xf32>
    %26 = arith.addf %23, %25 : vector<8x128xf32>
    %cst_14 = arith.constant 0.000000e+00 : f32
    %27 = vector.broadcast %cst_14 : f32 to vector<8x128xf32>
    %28 = arith.maximumf %26, %27 : vector<8x128xf32>
    %c0_15 = arith.constant 0 : index
    %c0_16 = arith.constant 0 : index
    %29 = vector.load %arg5[%c0_15, %c0_16] : memref<128x128xf32, #tpu.memory_space<vmem>>, vector<128x128xf32>
    %cst_17 = arith.constant dense<0.000000e+00> : vector<8x128xf32>
    %30 = tpu.matmul %28, %29, %cst_17 {dimension_numbers = #tpu.dot_dimension_numbers<[1], [0], [0], [1], [0, 0, 1, 1], [], []>} : vector<8x128xf32>, vector<128x128xf32>, vector<8x128xf32> -> vector<8x128xf32>
    %c0_18 = arith.constant 0 : index
    %c0_19 = arith.constant 0 : index
    %31 = vector.load %arg6[%c0_18, %c0_19] : memref<1x128xf32, #tpu.memory_space<vmem>>, vector<1x128xf32>
    %32 = vector.broadcast %31 : vector<1x128xf32> to vector<8x128xf32>
    %33 = arith.addf %30, %32 : vector<8x128xf32>
    %cst_20 = arith.constant dense<0.000000e+00> : vector<128xf32>
    %34 = vector.multi_reduction <add>, %33, %cst_20 [0] : vector<8x128xf32> to vector<128xf32>
    %35 = vector.shape_cast %34 : vector<128xf32> to vector<1x128xf32>
    %cst_21 = arith.constant 8.000000e+00 : f32
    %36 = vector.broadcast %cst_21 : f32 to vector<1x128xf32>
    %37 = arith.divf %35, %36 : vector<1x128xf32>
    %38 = vector.broadcast %37 : vector<1x128xf32> to vector<8x128xf32>
    %39 = arith.subf %33, %38 : vector<8x128xf32>
    %40 = arith.mulf %39, %39 : vector<8x128xf32>
    %cst_22 = arith.constant dense<0.000000e+00> : vector<128xf32>
    %41 = vector.multi_reduction <add>, %40, %cst_22 [0] : vector<8x128xf32> to vector<128xf32>
    %42 = vector.shape_cast %41 : vector<128xf32> to vector<1x128xf32>
    %cst_23 = arith.constant 8.000000e+00 : f32
    %43 = vector.broadcast %cst_23 : f32 to vector<1x128xf32>
    %44 = arith.divf %42, %43 : vector<1x128xf32>
    %c0_24 = arith.constant 0 : index
    %c0_25 = arith.constant 0 : index
    %45 = vector.load %arg7[%c0_24, %c0_25] : memref<1x128xf32, #tpu.memory_space<vmem>>, vector<1x128xf32>
    %cst_26 = arith.constant 9.99999974E-6 : f32
    %46 = vector.broadcast %cst_26 : f32 to vector<1x128xf32>
    %47 = arith.addf %44, %46 : vector<1x128xf32>
    %48 = math.rsqrt %47 : vector<1x128xf32>
    %49 = arith.mulf %45, %48 : vector<1x128xf32>
    %50 = vector.broadcast %49 : vector<1x128xf32> to vector<8x128xf32>
    %51 = arith.mulf %39, %50 : vector<8x128xf32>
    %c0_27 = arith.constant 0 : index
    %c0_28 = arith.constant 0 : index
    %52 = vector.load %arg8[%c0_27, %c0_28] : memref<1x128xf32, #tpu.memory_space<vmem>>, vector<1x128xf32>
    %53 = vector.broadcast %52 : vector<1x128xf32> to vector<8x128xf32>
    %54 = arith.addf %51, %53 : vector<8x128xf32>
    %cst_29 = arith.constant 0.000000e+00 : f32
    %55 = vector.broadcast %cst_29 : f32 to vector<8x128xf32>
    %56 = arith.maximumf %54, %55 : vector<8x128xf32>
    %c0_30 = arith.constant 0 : index
    %c0_31 = arith.constant 0 : index
    %57 = vector.load %arg9[%c0_30, %c0_31] : memref<128x128xf32, #tpu.memory_space<vmem>>, vector<128x128xf32>
    %cst_32 = arith.constant dense<0.000000e+00> : vector<8x128xf32>
    %58 = tpu.matmul %56, %57, %cst_32 {dimension_numbers = #tpu.dot_dimension_numbers<[1], [0], [0], [1], [0, 0, 1, 1], [], []>} : vector<8x128xf32>, vector<128x128xf32>, vector<8x128xf32> -> vector<8x128xf32>
    %c0_33 = arith.constant 0 : index
    %c0_34 = arith.constant 0 : index
    %59 = vector.load %arg10[%c0_33, %c0_34] : memref<1x128xf32, #tpu.memory_space<vmem>>, vector<1x128xf32>
    %60 = vector.broadcast %59 : vector<1x128xf32> to vector<8x128xf32>
    %61 = arith.addf %58, %60 : vector<8x128xf32>
    %cst_35 = arith.constant dense<0.000000e+00> : vector<128xf32>
    %62 = vector.multi_reduction <add>, %61, %cst_35 [0] : vector<8x128xf32> to vector<128xf32>
    %63 = vector.shape_cast %62 : vector<128xf32> to vector<1x128xf32>
    %cst_36 = arith.constant 8.000000e+00 : f32
    %64 = vector.broadcast %cst_36 : f32 to vector<1x128xf32>
    %65 = arith.divf %63, %64 : vector<1x128xf32>
    %66 = vector.broadcast %65 : vector<1x128xf32> to vector<8x128xf32>
    %67 = arith.subf %61, %66 : vector<8x128xf32>
    %68 = arith.mulf %67, %67 : vector<8x128xf32>
    %cst_37 = arith.constant dense<0.000000e+00> : vector<128xf32>
    %69 = vector.multi_reduction <add>, %68, %cst_37 [0] : vector<8x128xf32> to vector<128xf32>
    %70 = vector.shape_cast %69 : vector<128xf32> to vector<1x128xf32>
    %cst_38 = arith.constant 8.000000e+00 : f32
    %71 = vector.broadcast %cst_38 : f32 to vector<1x128xf32>
    %72 = arith.divf %70, %71 : vector<1x128xf32>
    %c0_39 = arith.constant 0 : index
    %c0_40 = arith.constant 0 : index
    %73 = vector.load %arg11[%c0_39, %c0_40] : memref<1x128xf32, #tpu.memory_space<vmem>>, vector<1x128xf32>
    %cst_41 = arith.constant 9.99999974E-6 : f32
    %74 = vector.broadcast %cst_41 : f32 to vector<1x128xf32>
    %75 = arith.addf %72, %74 : vector<1x128xf32>
    %76 = math.rsqrt %75 : vector<1x128xf32>
    %77 = arith.mulf %73, %76 : vector<1x128xf32>
    %78 = vector.broadcast %77 : vector<1x128xf32> to vector<8x128xf32>
    %79 = arith.mulf %67, %78 : vector<8x128xf32>
    %c0_42 = arith.constant 0 : index
    %c0_43 = arith.constant 0 : index
    %80 = vector.load %arg12[%c0_42, %c0_43] : memref<1x128xf32, #tpu.memory_space<vmem>>, vector<1x128xf32>
    %81 = vector.broadcast %80 : vector<1x128xf32> to vector<8x128xf32>
    %82 = arith.addf %79, %81 : vector<8x128xf32>
    %c0_44 = arith.constant 0 : index
    %c0_45 = arith.constant 0 : index
    %83 = vector.load %arg13[%c0_44, %c0_45] : memref<8x128xf32, #tpu.memory_space<vmem>>, vector<8x128xf32>
    tpu.vector_store %arg13[%c0_44, %c0_45], %82 {strides = array<i32>} : memref<8x128xf32, #tpu.memory_space<vmem>>, vector<8x128xf32>,
    return
  }
}

</mosaic_0001>

<bundles_post_ra>
// kernel: tpu_custom_call.1
= control target key start
LH: loop header
LB: loop body
LE: loop exit
PB: predicated region body
PF: predicated region fallthrough
CT: control target
= control target key end

     0   :  { %18 = vsyncpa [#allocation3], 0  ;;  %s978_s0 = inlined_call_operand.hbm [shape: f32[8,128], index: 0, kind: input, shape index: {}]   ;;  %s979_s1 = inlined_call_operand.hbm [shape: f32[128,128], index: 1, kind: input, shape index: {}]   ;;  %s980_s2 = inlined_call_operand.vmem [shape: f32[1,128], index: 2, kind: input, shape index: {}]   ;;  %s981_s3 = inlined_call_operand.vmem [shape: f32[1,128], index: 3, kind: input, shape index: {}]   ;;  %s982_s4 = inlined_call_operand.vmem [shape: f32[1,128], index: 4, kind: input, shape index: {}]   ;;  %s983_s5 = inlined_call_operand.hbm [shape: f32[128,128], index: 5, kind: input, shape index: {}]   ;;  %s984_s6 = inlined_call_operand.vmem [shape: f32[1,128], index: 6, kind: input, shape index: {}]   ;;  %s985_s7 = inlined_call_operand.vmem [shape: f32[1,128], index: 7, kind: input, shape index: {}]   ;;  %s986_s8 = inlined_call_operand.vmem [shape: f32[1,128], index: 8, kind: input, shape index: {}]   ;;  %s987_s9 = inlined_call_operand.hbm [shape: f32[128,128], index: 9, kind: input, shape index: {}]   ;;  %s988_s10 = inlined_call_operand.vmem [shape: f32[1,128], index: 10, kind: input, shape index: {}]   ;;  %s989_s11 = inlined_call_operand.vmem [shape: f32[1,128], index: 11, kind: input, shape index: {}]   ;;  %s990_s12 = inlined_call_operand.vmem [shape: f32[1,128], index: 12, kind: input, shape index: {}]   ;;  %s991_s13 = inlined_call_operand.hbm [shape: f32[8,128], index: 13, kind: output, shape index: {}]  }
   0x1   :  { %19 = vsyncpa [#allocation6], 0 }
   0x2   :  { %20 = vsyncpa [#allocation9], 0 }
   0x3   :  { %21 = vsyncpa [#allocation4], 0  ;;  %s789_s25 = smov [#allocation5]  }
   0x4   :  { %s37_s26 = sshll.u32 %s789_s25, 4  ;;  %s38_s26 = int_to_ptr.vmem [resolvable:$true] %s37_s26 }
   0x5   :  { %s689_s27 = scalar_lea.vmem %s38_s26, 2048  ;;  %p694_p1 = scmp.lt.s32.totalorder %s38_s26, %s38_s26 }
   0x6   :  { %p690_p0 = scmp.ne.s32.totalorder %s38_s26, %s689_s27  ;;  %p695_p2 = scmp.lt.s32.totalorder %s689_s27, %s689_s27 }
   0x8   :  { %p696_p3 = por %p695_p2, %p694_p1 }
   0xa   :  { %p697_p4 = pnand %p696_p3, %p690_p0 }
   0xc   :  { %700 = shalt.err (!%p697_p4)
}
   0xd   :  { %s790_s28 = smov 128   ;;  %s791_s29 = smov 8  }
   0xe   :  { %43 = dma.hbm_to_vmem [thread:$0]  %s979_s1, 2048, %s38_s26, [#allocation6], %s790_s28, %s790_s28, %s791_s29  }
   0xf   :  { %s792_s15 = smov [#allocation2]   ;;  %s793_s17 = smov [#allocation7]  }
  0x10   :  { %s28_s16 = sshll.u32 %s792_s15, 4  ;;  %s55_s18 = sshll.u32 %s793_s17, 4  ;;  %s29_s16 = int_to_ptr.vmem [resolvable:$true] %s28_s16  ;;  %s56_s18 = int_to_ptr.vmem [resolvable:$true] %s55_s18 }
  0x11   :  { %s709_s19 = scalar_lea.vmem %s29_s16, 128  ;;  %p714_p6 = scmp.lt.s32.totalorder %s29_s16, %s29_s16 }
  0x12   :  { %p710_p5 = scmp.ne.s32.totalorder %s29_s16, %s709_s19  ;;  %p715_p7 = scmp.lt.s32.totalorder %s709_s19, %s709_s19 }
  0x14   :  { %p716_p8 = por %p715_p7, %p714_p6 }
  0x16   :  { %p717_p9 = pnand %p716_p8, %p710_p5 }
  0x18   :  { %720 = shalt.err (!%p717_p9)
}
  0x19   :  { %31 = dma.hbm_to_vmem [thread:$0]  %s978_s0, 128, %s29_s16, [#allocation3]  }
  0x1a   :  { %s729_s22 = scalar_lea.vmem %s56_s18, 2048  ;;  %p734_p11 = scmp.lt.s32.totalorder %s56_s18, %s56_s18 }
  0x1b   :  { %p730_p10 = scmp.ne.s32.totalorder %s56_s18, %s729_s22  ;;  %p735_p12 = scmp.lt.s32.totalorder %s729_s22, %s729_s22 }
  0x1d   :  { %p736_p13 = por %p735_p12, %p734_p11 }
  0x1f   :  { %p737_p0 = pnand %p736_p13, %p730_p10 }
  0x21   :  { %740 = shalt.err (!%p737_p0)
}
  0x22   :  { %61 = dma.hbm_to_vmem [thread:$0]  %s983_s5, 2048, %s56_s18, [#allocation6], %s790_s28, %s790_s28, %s791_s29  }
  0x23   :  { %s794_s24 = smov [#allocation8]  }
  0x24   :  { %s73_s25 = sshll.u32 %s794_s24, 4  ;;  %s74_s25 = int_to_ptr.vmem [resolvable:$true] %s73_s25 }
  0x25   :  { %s749_s26 = scalar_lea.vmem %s74_s25, 2048  ;;  %p754_p2 = scmp.lt.s32.totalorder %s74_s25, %s74_s25 }
  0x26   :  { %p750_p1 = scmp.ne.s32.totalorder %s74_s25, %s749_s26  ;;  %p755_p3 = scmp.lt.s32.totalorder %s749_s26, %s749_s26 }
  0x28   :  { %p756_p4 = por %p755_p3, %p754_p2 }
  0x2a   :  { %p757_p5 = pnand %p756_p4, %p750_p1 }
  0x2c   :  { %760 = shalt.err (!%p757_p5)
}
  0x2d   :  { %79 = dma.hbm_to_vmem [thread:$0]  %s987_s9, 2048, %s74_s25, [#allocation9], %s790_s28, %s790_s28, %s791_s29  }
  0x2e   :  { %781 = dma.done.wait [#allocation3], 128  }
  0x2f   :  { %782 = vsyncadd [#allocation3], 4294967168 }
  0x30   :  { %783 = dma.done.wait [#allocation6], 4096  }
  0x31   :  { %784 = vsyncadd [#allocation6], 4294963200 }
  0x32   :  { %785 = dma.done.wait [#allocation9], 2048  }
  0x33   :  { %786 = vsyncadd [#allocation9], 4294965248  ;;  %v795_v0 = vmov 0.0   ;;  %vm796_vm0 = vmmov 0   ;;  %v114_v1 = vld [vmem:[#allocation5 + $0x78] sm:$0xff]  ;;  %v113_v2 = vld [vmem:[#allocation5 + $0x70] sm:$0xff]  ;;  %v214_v55 = vlaneseq }
  0x34   :  { %561 = vmatprep.subr.mxu0 %v795_v0  ;;  %593 = vmatprep.mubr.msk.f32.mxu0 %vm796_vm0, %v795_v0  ;;  %v112_v3 = vld [vmem:[#allocation5 + $0x68] sm:$0xff]  ;;  %v111_v4 = vld [vmem:[#allocation5 + $0x60] sm:$0xff]  ;;  %v110_v5 = vld [vmem:[#allocation5 + $0x58] sm:$0xff]  ;;  %s797_s20 = smov [#allocation10]  }
  0x35   :  { %596 = vmatprep.subr.mxu1 %v795_v0  ;;  %628 = vmatprep.mubr.msk.f32.mxu1 %vm796_vm0, %v795_v0  ;;  %v109_v6 = vld [vmem:[#allocation5 + $0x50] sm:$0xff]  ;;  %v108_v7 = vld [vmem:[#allocation5 + $0x48] sm:$0xff]  ;;  %v107_v8 = vld [vmem:[#allocation5 + $0x40] sm:$0xff]  ;;  %v215_v56 = vshrl.u32 %v214_v55, 7  ;;  %s493_s21 = sshll.u32 %s797_s20, 4  ;;  %s494_s21 = int_to_ptr.vmem [resolvable:$true] %s493_s21 }
  0x36   :  { %562 = vmatpush3.msra.mxu0 %v114_v1  ;;  %v106_v9 = vld [vmem:[#allocation5 + $0x38] sm:$0xff]  ;;  %v105_v10 = vld [vmem:[#allocation5 + $0x30] sm:$0xff]  ;;  %v104_v11 = vld [vmem:[#allocation5 + $0x28] sm:$0xff]  ;;  %s761_s22 = scalar_lea.vmem %s494_s21, 128  ;;  %p766_p7 = scmp.lt.s32.totalorder %s494_s21, %s494_s21 }
  0x37   :  { %563 = vmatprep.subr.mxu0 %v795_v0  ;;  %v103_v12 = vld [vmem:[#allocation5 + $0x20] sm:$0xff]  ;;  %v102_v13 = vld [vmem:[#allocation5 + $0x18] sm:$0xff]  ;;  %v101_v14 = vld [vmem:[#allocation5 + $0x10] sm:$0xff]  ;;  %v934_v58 = vsub.s32 0, %v215_v56  ;;  %p762_p6 = scmp.ne.s32.totalorder %s494_s21, %s761_s22  ;;  %p767_p8 = scmp.lt.s32.totalorder %s761_s22, %s761_s22 }
  0x38   :  { %564 = vmatpush3.msra.mxu0 %v113_v2  ;;  %v100_v15 = vld [vmem:[#allocation5 + $0x8] sm:$0xff]  ;;  %v99_v16 = vld [vmem:[#allocation5] sm:$0xff]  ;;  %v98_v17 = vld [vmem:[#allocation2] sm:$0xff] }
  0x39   :  { %565 = vmatprep.subr.mxu0 %v795_v0  ;;  %v244_v18 = vld [vmem:[#allocation7 + $0x78] sm:$0xff]  ;;  %v243_v19 = vld [vmem:[#allocation7 + $0x70] sm:$0xff]  ;;  %v242_v20 = vld [vmem:[#allocation7 + $0x68] sm:$0xff]  ;;  %p768_p9 = por %p767_p8, %p766_p7 }
  0x3a   :  { %566 = vmatpush3.msra.mxu0 %v112_v3  ;;  %597 = vmatpush3.msra.mxu1 %v244_v18  ;;  %v241_v21 = vld [vmem:[#allocation7 + $0x60] sm:$0xff]  ;;  %v240_v22 = vld [vmem:[#allocation7 + $0x58] sm:$0xff]  ;;  %v239_v23 = vld [vmem:[#allocation7 + $0x50] sm:$0xff] }
  0x3b   :  { %567 = vmatprep.subr.mxu0 %v795_v0  ;;  %598 = vmatprep.subr.mxu1 %v795_v0  ;;  %v238_v24 = vld [vmem:[#allocation7 + $0x48] sm:$0xff]  ;;  %v237_v25 = vld [vmem:[#allocation7 + $0x40] sm:$0xff]  ;;  %v236_v26 = vld [vmem:[#allocation7 + $0x38] sm:$0xff]  ;;  %p769_p10 = pnand %p768_p9, %p762_p6 }
  0x3c   :  { %568 = vmatpush3.msra.mxu0 %v111_v4  ;;  %599 = vmatpush3.msra.mxu1 %v243_v19  ;;  %v235_v27 = vld [vmem:[#allocation7 + $0x30] sm:$0xff]  ;;  %v234_v28 = vld [vmem:[#allocation7 + $0x28] sm:$0xff]  ;;  %v233_v29 = vld [vmem:[#allocation7 + $0x20] sm:$0xff] }
  0x3d   :  { %569 = vmatprep.subr.mxu0 %v795_v0  ;;  %600 = vmatprep.subr.mxu1 %v795_v0  ;;  %v232_v30 = vld [vmem:[#allocation7 + $0x18] sm:$0xff]  ;;  %v231_v31 = vld [vmem:[#allocation7 + $0x10] sm:$0xff]  ;;  %v230_v32 = vld [vmem:[#allocation7 + $0x8] sm:$0xff] }
  0x3e   :  { %570 = vmatpush3.msra.mxu0 %v110_v5  ;;  %601 = vmatpush3.msra.mxu1 %v242_v20  ;;  %v229_v33 = vld [vmem:[#allocation7] sm:$0xff]  ;;  %v504_v34 = vld [vmem:[%s980_s2] ss:$0 sm:$0xff]  ;;  %v372_v4 = vld [vmem:[#allocation8 + $0x70] sm:$0xff] }
  0x3f   :  { %571 = vmatprep.subr.mxu0 %v795_v0  ;;  %602 = vmatprep.subr.mxu1 %v795_v0  ;;  %v209_v57 = vld [vmem:[%s981_s3] sm:$0x1]  ;;  %v371_v5 = vld [vmem:[#allocation8 + $0x68] sm:$0xff]  ;;  %v358_v18 = vld [vmem:[#allocation8] sm:$0xff] }
  0x40   :  { %572 = vmatpush3.msra.mxu0 %v109_v6  ;;  %603 = vmatpush3.msra.mxu1 %v241_v21  ;;  %v505_v62 = vld [vmem:[%s982_s4] ss:$0 sm:$0xff]  ;;  %v370_v6 = vld [vmem:[#allocation8 + $0x60] sm:$0xff] }
  0x41   :  { %573 = vmatprep.subr.mxu0 %v795_v0  ;;  %604 = vmatprep.subr.mxu1 %v795_v0  ;;  %v373_v3 = vld [vmem:[#allocation8 + $0x78] sm:$0xff] }
  0x42   :  { %574 = vmatpush3.msra.mxu0 %v108_v7  ;;  %605 = vmatpush3.msra.mxu1 %v240_v22  ;;  %v369_v7 = vld [vmem:[#allocation8 + $0x58] sm:$0xff] }
  0x43   :  { %575 = vmatprep.subr.mxu0 %v795_v0  ;;  %606 = vmatprep.subr.mxu1 %v795_v0  ;;  %v506_v19 = vld [vmem:[%s984_s6] ss:$0 sm:$0xff] }
  0x44   :  { %576 = vmatpush3.msra.mxu0 %v107_v8  ;;  %607 = vmatpush3.msra.mxu1 %v239_v23  ;;  %v368_v8 = vld [vmem:[#allocation8 + $0x50] sm:$0xff] }
  0x45   :  { %577 = vmatprep.subr.mxu0 %v795_v0  ;;  %608 = vmatprep.subr.mxu1 %v795_v0 }
  0x46   :  { %578 = vmatpush3.msra.mxu0 %v106_v9  ;;  %609 = vmatpush3.msra.mxu1 %v238_v24  ;;  %v367_v9 = vld [vmem:[#allocation8 + $0x48] sm:$0xff] }
  0x47   :  { %579 = vmatprep.subr.mxu0 %v795_v0  ;;  %610 = vmatprep.subr.mxu1 %v795_v0 }
  0x48   :  { %580 = vmatpush3.msra.mxu0 %v105_v10  ;;  %611 = vmatpush3.msra.mxu1 %v237_v25  ;;  %v366_v10 = vld [vmem:[#allocation8 + $0x40] sm:$0xff] }
  0x49   :  { %581 = vmatprep.subr.mxu0 %v795_v0  ;;  %612 = vmatprep.subr.mxu1 %v795_v0 }
  0x4a   :  { %582 = vmatpush3.msra.mxu0 %v104_v11  ;;  %613 = vmatpush3.msra.mxu1 %v236_v26  ;;  %v365_v11 = vld [vmem:[#allocation8 + $0x38] sm:$0xff] }
  0x4b   :  { %583 = vmatprep.subr.mxu0 %v795_v0  ;;  %614 = vmatprep.subr.mxu1 %v795_v0 }
  0x4c   :  { %584 = vmatpush3.msra.mxu0 %v103_v12  ;;  %615 = vmatpush3.msra.mxu1 %v235_v27  ;;  %v364_v12 = vld [vmem:[#allocation8 + $0x30] sm:$0xff] }
  0x4d   :  { %585 = vmatprep.subr.mxu0 %v795_v0  ;;  %616 = vmatprep.subr.mxu1 %v795_v0 }
  0x4e   :  { %586 = vmatpush3.msra.mxu0 %v102_v13  ;;  %617 = vmatpush3.msra.mxu1 %v234_v28  ;;  %v363_v13 = vld [vmem:[#allocation8 + $0x28] sm:$0xff] }
  0x4f   :  { %587 = vmatprep.subr.mxu0 %v795_v0  ;;  %618 = vmatprep.subr.mxu1 %v795_v0 }
  0x50   :  { %588 = vmatpush3.msra.mxu0 %v101_v14  ;;  %619 = vmatpush3.msra.mxu1 %v233_v29  ;;  %v362_v14 = vld [vmem:[#allocation8 + $0x20] sm:$0xff] }
  0x51   :  { %589 = vmatprep.subr.mxu0 %v795_v0  ;;  %620 = vmatprep.subr.mxu1 %v795_v0 }
  0x52   :  { %590 = vmatpush3.msra.mxu0 %v100_v15  ;;  %621 = vmatpush3.msra.mxu1 %v232_v30  ;;  %v361_v15 = vld [vmem:[#allocation8 + $0x18] sm:$0xff] }
  0x53   :  { %591 = vmatprep.subr.mxu0 %v795_v0  ;;  %622 = vmatprep.subr.mxu1 %v795_v0 }
  0x54   :  { %592 = vmatpush3.msra.mxu0 %v99_v16  ;;  %623 = vmatpush3.msra.mxu1 %v231_v31  ;;  %v360_v16 = vld [vmem:[#allocation8 + $0x10] sm:$0xff] }
  0x55   :  { %594 = vmatmul.mubr.f32.vlgmr.msra.gmra.mxu0 %v98_v17  ;;  %631 = vmatprep.subr.mxu0 %v795_v0  ;;  %v359_v17 = vld [vmem:[#allocation8 + $0x8] sm:$0xff] }
  0x56   :  { %663 = vmatprep.mubr.msk.f32.mxu0 %vm796_vm0, %v795_v0  ;;  %624 = vmatprep.subr.mxu1 %v795_v0 }
  0x57   :  { %625 = vmatpush3.msra.mxu1 %v230_v32  ;;  %632 = vmatpush3.msra.mxu0 %v373_v3 }
  0x58   :  { %626 = vmatprep.subr.mxu1 %v795_v0  ;;  %633 = vmatprep.subr.mxu0 %v795_v0 }
  0x59   :  { %627 = vmatpush3.msra.mxu1 %v229_v33  ;;  %634 = vmatpush3.msra.mxu0 %v372_v4 }
  0x5a   :  { %635 = vmatprep.subr.mxu0 %v795_v0 }
  0x5b   :  { %636 = vmatpush3.msra.mxu0 %v371_v5 }
  0x5c   :  { %637 = vmatprep.subr.mxu0 %v795_v0 }
  0x5d   :  { %638 = vmatpush3.msra.mxu0 %v370_v6  ;;  %v467_v6 = vld [vmem:[%s989_s11] sm:$0x1] }
  0x5e   :  { %639 = vmatprep.subr.mxu0 %v795_v0 }
  0x5f   :  { %640 = vmatpush3.msra.mxu0 %v369_v7 }
  0x60   :  { %641 = vmatprep.subr.mxu0 %v795_v0 }
  0x61   :  { %642 = vmatpush3.msra.mxu0 %v368_v8 }
  0x62   :  { %643 = vmatprep.subr.mxu0 %v795_v0 }
  0x63   :  { %644 = vmatpush3.msra.mxu0 %v367_v9 }
  0x64   :  { %645 = vmatprep.subr.mxu0 %v795_v0 }
  0x65   :  { %646 = vmatpush3.msra.mxu0 %v366_v10  ;;  %v509_v10 = vld [vmem:[%s990_s12] ss:$0 sm:$0xff] }
  0x66   :  { %647 = vmatprep.subr.mxu0 %v795_v0 }
  0x67   :  { %648 = vmatpush3.msra.mxu0 %v365_v11 }
  0x68   :  { %649 = vmatprep.subr.mxu0 %v795_v0 }
  0x69   :  { %650 = vmatpush3.msra.mxu0 %v364_v12 }
  0x6a   :  { %651 = vmatprep.subr.mxu0 %v795_v0 }
  0x6b   :  { %652 = vmatpush3.msra.mxu0 %v363_v13 }
  0x6c   :  { %653 = vmatprep.subr.mxu0 %v795_v0 }
  0x6d   :  { %654 = vmatpush3.msra.mxu0 %v362_v14 }
  0x6e   :  { %655 = vmatprep.subr.mxu0 %v795_v0 }
  0x6f   :  { %656 = vmatpush3.msra.mxu0 %v361_v15 }
  0x70   :  { %657 = vmatprep.subr.mxu0 %v795_v0 }
  0x71   :  { %658 = vmatpush3.msra.mxu0 %v360_v16 }
  0x72   :  { %659 = vmatprep.subr.mxu0 %v795_v0 }
  0x73   :  { %660 = vmatpush3.msra.mxu0 %v359_v17 }
  0x74   :  { %661 = vmatprep.subr.mxu0 %v795_v0 }
  0x75   :  { %662 = vmatpush3.msra.mxu0 %v358_v18 }
 0x115   :  { %v188_v35 = vpop.f32.mrf.mxu0 }
 0x116   :  { %v189_v36 = vadd.f32 %v504_v34, %v188_v35 }
 0x117   :  { %v595_v37 = vpop.f32.mrf.mxu0 }
 0x118   :  { %v192_v38 = vrot.slane %v189_v36, 4 }
 0x11a   :  { %v193_v39 = vadd.f32 %v192_v38, %v189_v36 }
 0x11c   :  { %v194_v40 = vrot.slane %v193_v39, 2 }
 0x11e   :  { %v195_v41 = vadd.f32 %v194_v40, %v193_v39  ;;  %v338_v39 = vld [vmem:[%s985_s7] sm:$0x1] }
 0x120   :  { %v196_v42 = vrot.slane %v195_v41, 1 }
 0x122   :  { %v197_v43 = vadd.f32 %v196_v42, %v195_v41 }
 0x124   :  { %v199_v44 = vmul.f32 0.125, %v197_v43  ;;  %v507_v43 = vld [vmem:[%s986_s8] ss:$0 sm:$0xff] }
 0x126   :  { %v200_v45 = vsub.f32 %v189_v36, %v199_v44 }
 0x128   :  { %v201_v46 = vmul.f32 %v200_v45, %v200_v45 }
 0x12a   :  { %v202_v47 = vrot.slane %v201_v46, 4 }
 0x12c   :  { %v203_v48 = vadd.f32 %v202_v47, %v201_v46  ;;  %v508_v47 = vld [vmem:[%s988_s10] ss:$0 sm:$0xff] }
 0x12e   :  { %v204_v49 = vrot.slane %v203_v48, 2 }
 0x130   :  { %v205_v50 = vadd.f32 %v204_v49, %v203_v48 }
 0x132   :  { %v206_v51 = vrot.slane %v205_v50, 1 }
 0x134   :  { %v207_v52 = vadd.f32 %v206_v51, %v205_v50 }
 0x136   :  { %v208_v53 = vmul.f32 0.125, %v207_v52 }
 0x138   :  { %v210_v54 = vadd.f32 1e-05, %v208_v53 }
 0x13a   :  { %675 = vrsqrt.f32 %v210_v54 }
 0x147   :  { %v676_v59 = vpop.eup %675 }
 0x148   :  { %v212_v60 = vmul.f32 %v676_v59, %v209_v57 }
 0x14a   :  { %v217_v61 = vrot.slane %v212_v60, %v934_v58 }
 0x14c   :  { %v219_v63 = vmul.f32 %v217_v61, %v200_v45 }
 0x14e   :  { %v227_v1 = vadd.f32 %v505_v62, %v219_v63 }
 0x150   :  { %v228_v2 = vmax.f32 %v227_v1, 0.0 }
 0x152   :  { %629 = vmatmul.mubr.f32.vlgmr.msra.gmra.mxu1 %v228_v2 }
 0x212   :  { %v318_v20 = vpop.f32.mrf.mxu1 }
 0x213   :  { %v319_v21 = vadd.f32 %v506_v19, %v318_v20 }
 0x214   :  { %v630_v22 = vpop.f32.mrf.mxu1 }
 0x215   :  { %v322_v23 = vrot.slane %v319_v21, 4 }
 0x217   :  { %v323_v24 = vadd.f32 %v322_v23, %v319_v21 }
 0x219   :  { %v324_v25 = vrot.slane %v323_v24, 2 }
 0x21b   :  { %v325_v26 = vadd.f32 %v324_v25, %v323_v24 }
 0x21d   :  { %v326_v27 = vrot.slane %v325_v26, 1 }
 0x21f   :  { %v327_v28 = vadd.f32 %v326_v27, %v325_v26 }
 0x221   :  { %v328_v29 = vmul.f32 0.125, %v327_v28 }
 0x223   :  { %v329_v30 = vsub.f32 %v319_v21, %v328_v29 }
 0x225   :  { %v330_v31 = vmul.f32 %v329_v30, %v329_v30 }
 0x227   :  { %v331_v32 = vrot.slane %v330_v31, 4 }
 0x229   :  { %v332_v33 = vadd.f32 %v331_v32, %v330_v31 }
 0x22b   :  { %v333_v0 = vrot.slane %v332_v33, 2 }
 0x22d   :  { %v334_v34 = vadd.f32 %v333_v0, %v332_v33 }
 0x22f   :  { %v335_v35 = vrot.slane %v334_v34, 1 }
 0x231   :  { %v336_v36 = vadd.f32 %v335_v35, %v334_v34 }
 0x233   :  { %v337_v37 = vmul.f32 0.125, %v336_v36 }
 0x235   :  { %v339_v38 = vadd.f32 1e-05, %v337_v37 }
 0x237   :  { %677 = vrsqrt.f32 %v339_v38 }
 0x244   :  { %v678_v40 = vpop.eup %677 }
 0x245   :  { %v341_v41 = vmul.f32 %v678_v40, %v338_v39 }
 0x247   :  { %v346_v42 = vrot.slane %v341_v41, %v934_v58 }
 0x249   :  { %v348_v44 = vmul.f32 %v346_v42, %v329_v30 }
 0x24b   :  { %v356_v45 = vadd.f32 %v507_v43, %v348_v44 }
 0x24d   :  { %v357_v46 = vmax.f32 %v356_v45, 0.0 }
 0x24f   :  { %664 = vmatmul.mubr.f32.vlgmr.msra.gmra.mxu0 %v357_v46 }
 0x30f   :  { %v447_v48 = vpop.f32.mrf.mxu0 }
 0x310   :  { %v448_v49 = vadd.f32 %v508_v47, %v447_v48 }
 0x311   :  { %v665_v50 = vpop.f32.mrf.mxu0 }
 0x312   :  { %v451_v51 = vrot.slane %v448_v49, 4 }
 0x314   :  { %v452_v52 = vadd.f32 %v451_v51, %v448_v49 }
 0x316   :  { %v453_v53 = vrot.slane %v452_v52, 2 }
 0x318   :  { %v454_v54 = vadd.f32 %v453_v53, %v452_v52 }
 0x31a   :  { %v455_v55 = vrot.slane %v454_v54, 1 }
 0x31c   :  { %v456_v56 = vadd.f32 %v455_v55, %v454_v54 }
 0x31e   :  { %v457_v57 = vmul.f32 0.125, %v456_v56 }
 0x320   :  { %v458_v59 = vsub.f32 %v448_v49, %v457_v57 }
 0x322   :  { %v459_v60 = vmul.f32 %v458_v59, %v458_v59 }
 0x324   :  { %v460_v61 = vrot.slane %v459_v60, 4 }
 0x326   :  { %v461_v62 = vadd.f32 %v460_v61, %v459_v60 }
 0x328   :  { %v462_v63 = vrot.slane %v461_v62, 2 }
 0x32a   :  { %v463_v1 = vadd.f32 %v462_v63, %v461_v62 }
 0x32c   :  { %v464_v2 = vrot.slane %v463_v1, 1 }
 0x32e   :  { %v465_v3 = vadd.f32 %v464_v2, %v463_v1 }
 0x330   :  { %v466_v4 = vmul.f32 0.125, %v465_v3 }
 0x332   :  { %v468_v5 = vadd.f32 1e-05, %v466_v4 }
 0x334   :  { %679 = vrsqrt.f32 %v468_v5 }
 0x341   :  { %v680_v7 = vpop.eup %679 }
 0x342   :  { %v470_v8 = vmul.f32 %v680_v7, %v467_v6 }
 0x344   :  { %v475_v9 = vrot.slane %v470_v8, %v934_v58 }
 0x346   :  { %v477_v11 = vmul.f32 %v475_v9, %v458_v59 }
 0x348   :  { %v485_v12 = vadd.f32 %v509_v10, %v477_v11 }
 0x34a   :  { %486 = vst [vmem:[#allocation10] sm:$0xff] %v485_v12 }
 0x34b   :  { %772 = shalt.err (!%p769_p10)
}
 0x34c   :  { %496 = dma.vmem_to_hbm [thread:$0]  %s494_s21, 128, %s991_s13, [#allocation4]  }
 0x34d   :  { %787 = dma.done.wait [#allocation4], 128  }
 0x34e   :  { %788 = vsyncadd [#allocation4], 4294967168 }
 0x34f   :  { %500 = vsyncpa [#allocation3], 1 }
 0x350   :  { %501 = vsyncpa [#allocation6], 1 }
 0x351   :  { %502 = vsyncpa [#allocation9], 1 }
 0x352   :  { %503 = vsyncpa [#allocation4], 1 }

</bundles_post_ra>
